<compile_context>
chip_gen: v7x
topology: tpu7x:2x2x1
jax: 0.10.0
libtpu: 0.0.40
codegen_flags: <defaults>
</compile_context>

<pallas_src>
import jax
import jax.numpy as jnp
from jax import lax
from jax.experimental import pallas as pl
from jax.experimental.pallas import tpu as pltpu

# ----------------------------- configuration -------------------------------
J3 = 17 * 3          # input_dim = 51
WIN = 9              # window_size
HALF = WIN // 2      # 4
LANES = 64           # lane-padded feature width: [mask | 51 keypoints | 0-pad]
MASK_LANE = 0        # lane 0: per-row mask (never contributes to the matmul)
FEAT_LANE = 1        # lanes 1..51: keypoint features
EPS = 1e-5
CHUNK_ROWS = 256     # output rows per unrolled in-kernel step (bounds acc size)


def _round_up(x, m):
    return ((x + m - 1) // m) * m


# --------------------------------- kernel ----------------------------------
def _make_pose_kernel(t_out, chunk):
    """Kernel body for one batch element (grid = (B,)).

    x_ref: (T_halo, 64)     packed rows, time-halo padded (halo = WIN - 1)
    w_ref: (9, 64, E_pad)   folded conv*BN weight slice per window offset
    b_ref: (1, E_pad)       folded bias (f32)
    o_ref: (T_out, E_pad)   lane-dense output
    """
    def kernel(x_ref, w_ref, b_ref, o_ref):
        bias = b_ref[...]                                   # (1, E_pad) f32
        for c0 in range(0, t_out, chunk):                   # static unroll
            ch = min(chunk, t_out - c0)
            # conv as 9 accumulating K=64 MXU matmuls (f32 accumulation).
            acc = jnp.dot(x_ref[c0:c0 + ch, :], w_ref[0],
                          preferred_element_type=jnp.float32)
            for k in range(1, WIN):
                acc += jnp.dot(x_ref[c0 + k:c0 + k + ch, :], w_ref[k],
                               preferred_element_type=jnp.float32)
            y = jnp.maximum(acc + bias, 0.0)                # bias + ReLU (f32)
            # mask rides in lane 0 of the window-center slice (zero HBM cost).
            m = x_ref[HALF + c0:HALF + c0 + ch, MASK_LANE:MASK_LANE + 1]
            o_ref[c0:c0 + ch, :] = (y * m.astype(jnp.float32)).astype(o_ref.dtype)
    return kernel


# ------------------------- parameter folding (1x) ---------------------------
def fold_pose_embedding_params(params, matmul_dtype=jnp.bfloat16):
    """Fold eval-mode BatchNorm + conv bias into per-window-offset weight
    slices.  Constant per parameter set -> hoisted off the per-call path."""
    f32 = jnp.float32
    E = params["conv_w"].shape[0]
    E_pad = _round_up(E, 128)
    s = params["bn_gamma"].astype(f32) * lax.rsqrt(params["bn_var"].astype(f32) + EPS)
    # conv_w: (E, 1, 51, 9) -> scaled -> (9, 51, E) per-offset slices
    w_scaled = params["conv_w"][:, 0].astype(f32) * s[:, None, None]   # (E, 51, 9)
    w_kde = jnp.transpose(w_scaled, (2, 1, 0))                          # (9, 51, E)
    w_slices = jnp.zeros((WIN, LANES, E_pad), f32)
    w_slices = w_slices.at[:, FEAT_LANE:FEAT_LANE + J3, :E].set(w_kde)
    b_f = (params["conv_b"].astype(f32) - params["bn_mean"].astype(f32)) * s \
        + params["bn_beta"].astype(f32)
    bias_row = jnp.zeros((1, E_pad), f32).at[0, :E].set(b_f)
    return {"w_slices": w_slices.astype(matmul_dtype),
            "bias_row": bias_row,                 # kept f32 for accuracy
            "embedding_dim": E}


# ------------------------------- forward pass -------------------------------
def pose_embedding_forward(x_keypoints, mask, folded, *, out_dtype=jnp.float32):
    """x_keypoints: (B, T, 51), mask: (B, T)  ->  (B, T, E) out_dtype."""
    B, T, D = x_keypoints.shape
    assert D == J3
    w_slices = folded["w_slices"]
    bias_row = folded["bias_row"]
    E = folded["embedding_dim"]
    E_pad = w_slices.shape[-1]
    matmul_dtype = w_slices.dtype

    # dtype-native sublane multiple: 8 (f32), 16 (bf16), 32 (fp8/int8)
    itemsize = jnp.dtype(matmul_dtype).itemsize
    rmult = 8 * (4 // itemsize)
    T_out = _round_up(max(T, rmult), rmult)
    T_halo = _round_up(T_out + WIN - 1, rmult)

    # Lane-dense pack, built directly in matmul dtype (no f32 intermediate):
    #   lane 0 = mask, lanes 1..51 = keypoints, lanes 52..63 = 0.
    # Conv temporal zero-padding is folded into the time halo.
    body = jnp.concatenate(
        [mask[..., None].astype(matmul_dtype),
         x_keypoints.astype(matmul_dtype),
         jnp.zeros((B, T, LANES - FEAT_LANE - J3), matmul_dtype)], axis=-1)
    xp = jnp.pad(body, ((0, 0), (HALF, T_halo - T - HALF), (0, 0)))

    chunk = min(CHUNK_ROWS, T_out)
    kernel = _make_pose_kernel(T_out, chunk)

    cost = pl.CostEstimate(
        flops=2 * B * T_out * (WIN * LANES) * E_pad,
        transcendentals=0,
        bytes_accessed=(B * T_halo * LANES * itemsize            # packed input
                        + WIN * LANES * E_pad * itemsize         # weights
                        + E_pad * 4                              # bias
                        + B * T_out * E_pad * jnp.dtype(out_dtype).itemsize))

    grid_spec = pltpu.PrefetchScalarGridSpec(
        num_scalar_prefetch=0,
        grid=(B,),
        in_specs=[
            # full padded time per batch; DMA'd once per batch element
            pl.BlockSpec((None, T_halo, LANES), lambda b: (b, 0, 0)),
            # weights / bias: constant block index -> DMA'd once total
            pl.BlockSpec((WIN, LANES, E_pad), lambda b: (0, 0, 0)),
            pl.BlockSpec((1, E_pad), lambda b: (0, 0)),
        ],
        out_specs=pl.BlockSpec((None, T_out, E_pad), lambda b: (b, 0, 0)),
    )
    out = pl.pallas_call(
        kernel,
        out_shape=jax.ShapeDtypeStruct((B, T_out, E_pad), out_dtype),
        grid_spec=grid_spec,
        compiler_params=pltpu.CompilerParams(
            dimension_semantics=("parallel",)),
        cost_estimate=cost,
    )(xp, w_slices, bias_row)

    return out[:, :T, :E]


# ------------------------- pure-JAX reference (NCHW) ------------------------
def pose_embedding_reference(x_keypoints, mask, params):
    x = jnp.transpose(x_keypoints[:, None, :, :], (0, 1, 3, 2))   # (B,1,51,T)
    y = lax.conv_general_dilated(
        x, params["conv_w"], window_strides=(1, 1),
        padding=((0, 0), (HALF, HALF)),
        dimension_numbers=("NCHW", "OIHW", "NCHW"))               # (B,E,1,T)
    y = y[:, :, 0, :] + params["conv_b"][None, :, None]           # (B,E,T)
    inv = 1.0 / jnp.sqrt(params["bn_var"] + EPS)
    y = (y - params["bn_mean"][None, :, None]) * inv[None, :, None]
    y = y * params["bn_gamma"][None, :, None] + params["bn_beta"][None, :, None]
    y = jnp.maximum(y, 0.0)
    y = y * mask[:, None, :]
    return jnp.transpose(y, (0, 2, 1))                            # (B,T,E)


if __name__ == "__main__":
    B, T, E = 2, 8, 32     # small shapes: batch=2, seq=8, pose_embedding_dim=32

    key = jax.random.PRNGKey(0)
    k_x, k_m, k_w, k_b, k_g, k_bt, k_mu, k_v = jax.random.split(key, 8)

    x_keypoints = jax.random.normal(k_x, (B, T, J3), dtype=jnp.float32)
    mask = (jax.random.uniform(k_m, (B, T)) > 0.3).astype(jnp.float32)

    params = {
        "conv_w": 0.1 * jax.random.normal(k_w, (E, 1, J3, WIN), jnp.float32),
        "conv_b": 0.1 * jax.random.normal(k_b, (E,), jnp.float32),
        "bn_gamma": 1.0 + 0.1 * jax.random.normal(k_g, (E,), jnp.float32),
        "bn_beta": 0.1 * jax.random.normal(k_bt, (E,), jnp.float32),
        "bn_mean": 0.1 * jax.random.normal(k_mu, (E,), jnp.float32),
        "bn_var": jax.random.uniform(k_v, (E,), jnp.float32, 0.5, 1.5),
    }

    ref = pose_embedding_reference(x_keypoints, mask, params)

    # f32 matmul path: tight tolerance vs reference.
    folded_f32 = fold_pose_embedding_params(params, matmul_dtype=jnp.float32)
    out_f32 = jax.block_until_ready(
        pose_embedding_forward(x_keypoints, mask, folded_f32))
    assert out_f32.shape == (B, T, E)
    assert jnp.allclose(out_f32, ref, atol=1e-4, rtol=1e-4), "f32 mismatch"

    # bf16-input matmul path (recommended default): f32 accumulation, looser
    # tolerance due to bf16 input/weight rounding.
    folded_bf16 = fold_pose_embedding_params(params, matmul_dtype=jnp.bfloat16)
    out_bf16 = jax.block_until_ready(
        pose_embedding_forward(x_keypoints, mask, folded_bf16))
    assert out_bf16.shape == (B, T, E)
    assert jnp.allclose(out_bf16, ref, atol=3e-2, rtol=3e-2), "bf16 mismatch"

    print("KERNEL_OK")
</pallas_src>

<mosaic_0001>
module attributes {stable_mosaic.version = 11 : i64} {
  func.func @kernel(%arg0: i32, %arg1: memref<1x16x64xf32, #tpu.memory_space<vmem>>, %arg2: memref<9x64x128xf32, #tpu.memory_space<vmem>>, %arg3: memref<1x128xf32, #tpu.memory_space<vmem>>, %arg4: memref<1x8x128xf32, #tpu.memory_space<vmem>>) attributes {dimension_semantics = [#tpu.dimension_semantics<parallel>], iteration_bounds = array<i64: 2>, scalar_prefetch = 0 : i64, scratch_operands = 0 : i64, tpu.core_type = #tpu.core_type<tc>, window_params = [{transform_indices = @transform_0, window_bounds = array<i64: 1, 16, 64>}, {pipeline_mode = #tpu.pipeline_mode<synchronous>, transform_indices = @transform_1, window_bounds = array<i64: 9, 64, 128>}, {pipeline_mode = #tpu.pipeline_mode<synchronous>, transform_indices = @transform_2, window_bounds = array<i64: 1, 128>}, {transform_indices = @transform_3, window_bounds = array<i64: 1, 8, 128>}]} {
    %c0 = arith.constant 0 : index
    %c0_0 = arith.constant 0 : index
    %0 = vector.load %arg3[%c0, %c0_0] : memref<1x128xf32, #tpu.memory_space<vmem>>, vector<1x128xf32>
    %c0_1 = arith.constant 0 : index
    %c0_2 = arith.constant 0 : index
    %c0_3 = arith.constant 0 : index
    %1 = vector.load %arg1[%c0_1, %c0_2, %c0_3] : memref<1x16x64xf32, #tpu.memory_space<vmem>>, vector<1x8x64xf32>
    %2 = vector.shape_cast %1 : vector<1x8x64xf32> to vector<8x64xf32>
    %c0_4 = arith.constant 0 : index
    %c0_5 = arith.constant 0 : index
    %c0_6 = arith.constant 0 : index
    %3 = vector.load %arg2[%c0_4, %c0_5, %c0_6] : memref<9x64x128xf32, #tpu.memory_space<vmem>>, vector<1x64x128xf32>
    %4 = vector.shape_cast %3 : vector<1x64x128xf32> to vector<64x128xf32>
    %cst = arith.constant dense<0.000000e+00> : vector<8x128xf32>
    %5 = tpu.matmul %2, %4, %cst {dimension_numbers = #tpu.dot_dimension_numbers<[1], [0], [0], [1], [0, 0, 1, 1], [], []>} : vector<8x64xf32>, vector<64x128xf32>, vector<8x128xf32> -> vector<8x128xf32>
    %c0_7 = arith.constant 0 : index
    %c1 = arith.constant 1 : index
    %c0_8 = arith.constant 0 : index
    %6 = vector.load %arg1[%c0_7, %c1, %c0_8] : memref<1x16x64xf32, #tpu.memory_space<vmem>>, vector<1x8x64xf32>
    %7 = vector.shape_cast %6 : vector<1x8x64xf32> to vector<8x64xf32>
    %c1_9 = arith.constant 1 : index
    %c0_10 = arith.constant 0 : index
    %c0_11 = arith.constant 0 : index
    %8 = vector.load %arg2[%c1_9, %c0_10, %c0_11] : memref<9x64x128xf32, #tpu.memory_space<vmem>>, vector<1x64x128xf32>
    %9 = vector.shape_cast %8 : vector<1x64x128xf32> to vector<64x128xf32>
    %cst_12 = arith.constant dense<0.000000e+00> : vector<8x128xf32>
    %10 = tpu.matmul %7, %9, %cst_12 {dimension_numbers = #tpu.dot_dimension_numbers<[1], [0], [0], [1], [0, 0, 1, 1], [], []>} : vector<8x64xf32>, vector<64x128xf32>, vector<8x128xf32> -> vector<8x128xf32>
    %11 = arith.addf %5, %10 : vector<8x128xf32>
    %c0_13 = arith.constant 0 : index
    %c2 = arith.constant 2 : index
    %c0_14 = arith.constant 0 : index
    %12 = vector.load %arg1[%c0_13, %c2, %c0_14] : memref<1x16x64xf32, #tpu.memory_space<vmem>>, vector<1x8x64xf32>
    %13 = vector.shape_cast %12 : vector<1x8x64xf32> to vector<8x64xf32>
    %c2_15 = arith.constant 2 : index
    %c0_16 = arith.constant 0 : index
    %c0_17 = arith.constant 0 : index
    %14 = vector.load %arg2[%c2_15, %c0_16, %c0_17] : memref<9x64x128xf32, #tpu.memory_space<vmem>>, vector<1x64x128xf32>
    %15 = vector.shape_cast %14 : vector<1x64x128xf32> to vector<64x128xf32>
    %cst_18 = arith.constant dense<0.000000e+00> : vector<8x128xf32>
    %16 = tpu.matmul %13, %15, %cst_18 {dimension_numbers = #tpu.dot_dimension_numbers<[1], [0], [0], [1], [0, 0, 1, 1], [], []>} : vector<8x64xf32>, vector<64x128xf32>, vector<8x128xf32> -> vector<8x128xf32>
    %17 = arith.addf %11, %16 : vector<8x128xf32>
    %c0_19 = arith.constant 0 : index
    %c3 = arith.constant 3 : index
    %c0_20 = arith.constant 0 : index
    %18 = vector.load %arg1[%c0_19, %c3, %c0_20] : memref<1x16x64xf32, #tpu.memory_space<vmem>>, vector<1x8x64xf32>
    %19 = vector.shape_cast %18 : vector<1x8x64xf32> to vector<8x64xf32>
    %c3_21 = arith.constant 3 : index
    %c0_22 = arith.constant 0 : index
    %c0_23 = arith.constant 0 : index
    %20 = vector.load %arg2[%c3_21, %c0_22, %c0_23] : memref<9x64x128xf32, #tpu.memory_space<vmem>>, vector<1x64x128xf32>
    %21 = vector.shape_cast %20 : vector<1x64x128xf32> to vector<64x128xf32>
    %cst_24 = arith.constant dense<0.000000e+00> : vector<8x128xf32>
    %22 = tpu.matmul %19, %21, %cst_24 {dimension_numbers = #tpu.dot_dimension_numbers<[1], [0], [0], [1], [0, 0, 1, 1], [], []>} : vector<8x64xf32>, vector<64x128xf32>, vector<8x128xf32> -> vector<8x128xf32>
    %23 = arith.addf %17, %22 : vector<8x128xf32>
    %c0_25 = arith.constant 0 : index
    %c4 = arith.constant 4 : index
    %c0_26 = arith.constant 0 : index
    %24 = vector.load %arg1[%c0_25, %c4, %c0_26] : memref<1x16x64xf32, #tpu.memory_space<vmem>>, vector<1x8x64xf32>
    %25 = vector.shape_cast %24 : vector<1x8x64xf32> to vector<8x64xf32>
    %c4_27 = arith.constant 4 : index
    %c0_28 = arith.constant 0 : index
    %c0_29 = arith.constant 0 : index
    %26 = vector.load %arg2[%c4_27, %c0_28, %c0_29] : memref<9x64x128xf32, #tpu.memory_space<vmem>>, vector<1x64x128xf32>
    %27 = vector.shape_cast %26 : vector<1x64x128xf32> to vector<64x128xf32>
    %cst_30 = arith.constant dense<0.000000e+00> : vector<8x128xf32>
    %28 = tpu.matmul %25, %27, %cst_30 {dimension_numbers = #tpu.dot_dimension_numbers<[1], [0], [0], [1], [0, 0, 1, 1], [], []>} : vector<8x64xf32>, vector<64x128xf32>, vector<8x128xf32> -> vector<8x128xf32>
    %29 = arith.addf %23, %28 : vector<8x128xf32>
    %c0_31 = arith.constant 0 : index
    %c5 = arith.constant 5 : index
    %c0_32 = arith.constant 0 : index
    %30 = vector.load %arg1[%c0_31, %c5, %c0_32] : memref<1x16x64xf32, #tpu.memory_space<vmem>>, vector<1x8x64xf32>
    %31 = vector.shape_cast %30 : vector<1x8x64xf32> to vector<8x64xf32>
    %c5_33 = arith.constant 5 : index
    %c0_34 = arith.constant 0 : index
    %c0_35 = arith.constant 0 : index
    %32 = vector.load %arg2[%c5_33, %c0_34, %c0_35] : memref<9x64x128xf32, #tpu.memory_space<vmem>>, vector<1x64x128xf32>
    %33 = vector.shape_cast %32 : vector<1x64x128xf32> to vector<64x128xf32>
    %cst_36 = arith.constant dense<0.000000e+00> : vector<8x128xf32>
    %34 = tpu.matmul %31, %33, %cst_36 {dimension_numbers = #tpu.dot_dimension_numbers<[1], [0], [0], [1], [0, 0, 1, 1], [], []>} : vector<8x64xf32>, vector<64x128xf32>, vector<8x128xf32> -> vector<8x128xf32>
    %35 = arith.addf %29, %34 : vector<8x128xf32>
    %c0_37 = arith.constant 0 : index
    %c6 = arith.constant 6 : index
    %c0_38 = arith.constant 0 : index
    %36 = vector.load %arg1[%c0_37, %c6, %c0_38] : memref<1x16x64xf32, #tpu.memory_space<vmem>>, vector<1x8x64xf32>
    %37 = vector.shape_cast %36 : vector<1x8x64xf32> to vector<8x64xf32>
    %c6_39 = arith.constant 6 : index
    %c0_40 = arith.constant 0 : index
    %c0_41 = arith.constant 0 : index
    %38 = vector.load %arg2[%c6_39, %c0_40, %c0_41] : memref<9x64x128xf32, #tpu.memory_space<vmem>>, vector<1x64x128xf32>
    %39 = vector.shape_cast %38 : vector<1x64x128xf32> to vector<64x128xf32>
    %cst_42 = arith.constant dense<0.000000e+00> : vector<8x128xf32>
    %40 = tpu.matmul %37, %39, %cst_42 {dimension_numbers = #tpu.dot_dimension_numbers<[1], [0], [0], [1], [0, 0, 1, 1], [], []>} : vector<8x64xf32>, vector<64x128xf32>, vector<8x128xf32> -> vector<8x128xf32>
    %41 = arith.addf %35, %40 : vector<8x128xf32>
    %c0_43 = arith.constant 0 : index
    %c7 = arith.constant 7 : index
    %c0_44 = arith.constant 0 : index
    %42 = vector.load %arg1[%c0_43, %c7, %c0_44] : memref<1x16x64xf32, #tpu.memory_space<vmem>>, vector<1x8x64xf32>
    %43 = vector.shape_cast %42 : vector<1x8x64xf32> to vector<8x64xf32>
    %c7_45 = arith.constant 7 : index
    %c0_46 = arith.constant 0 : index
    %c0_47 = arith.constant 0 : index
    %44 = vector.load %arg2[%c7_45, %c0_46, %c0_47] : memref<9x64x128xf32, #tpu.memory_space<vmem>>, vector<1x64x128xf32>
    %45 = vector.shape_cast %44 : vector<1x64x128xf32> to vector<64x128xf32>
    %cst_48 = arith.constant dense<0.000000e+00> : vector<8x128xf32>
    %46 = tpu.matmul %43, %45, %cst_48 {dimension_numbers = #tpu.dot_dimension_numbers<[1], [0], [0], [1], [0, 0, 1, 1], [], []>} : vector<8x64xf32>, vector<64x128xf32>, vector<8x128xf32> -> vector<8x128xf32>
    %47 = arith.addf %41, %46 : vector<8x128xf32>
    %c0_49 = arith.constant 0 : index
    %c8 = arith.constant 8 : index
    %c0_50 = arith.constant 0 : index
    %48 = vector.load %arg1[%c0_49, %c8, %c0_50] : memref<1x16x64xf32, #tpu.memory_space<vmem>>, vector<1x8x64xf32>
    %49 = vector.shape_cast %48 : vector<1x8x64xf32> to vector<8x64xf32>
    %c8_51 = arith.constant 8 : index
    %c0_52 = arith.constant 0 : index
    %c0_53 = arith.constant 0 : index
    %50 = vector.load %arg2[%c8_51, %c0_52, %c0_53] : memref<9x64x128xf32, #tpu.memory_space<vmem>>, vector<1x64x128xf32>
    %51 = vector.shape_cast %50 : vector<1x64x128xf32> to vector<64x128xf32>
    %cst_54 = arith.constant dense<0.000000e+00> : vector<8x128xf32>
    %52 = tpu.matmul %49, %51, %cst_54 {dimension_numbers = #tpu.dot_dimension_numbers<[1], [0], [0], [1], [0, 0, 1, 1], [], []>} : vector<8x64xf32>, vector<64x128xf32>, vector<8x128xf32> -> vector<8x128xf32>
    %53 = arith.addf %47, %52 : vector<8x128xf32>
    %54 = vector.broadcast %0 : vector<1x128xf32> to vector<8x128xf32>
    %55 = arith.addf %53, %54 : vector<8x128xf32>
    %cst_55 = arith.constant 0.000000e+00 : f32
    %56 = vector.broadcast %cst_55 : f32 to vector<8x128xf32>
    %57 = arith.maximumf %55, %56 : vector<8x128xf32>
    %c0_56 = arith.constant 0 : index
    %c4_57 = arith.constant 4 : index
    %c0_58 = arith.constant 0 : index
    %58 = vector.load %arg1[%c0_56, %c4_57, %c0_58] : memref<1x16x64xf32, #tpu.memory_space<vmem>>, vector<1x8x1xf32>
    %59 = vector.shape_cast %58 : vector<1x8x1xf32> to vector<8x1xf32>
    %60 = vector.broadcast %59 : vector<8x1xf32> to vector<8x128xf32>
    %61 = arith.mulf %57, %60 : vector<8x128xf32>
    %c0_59 = arith.constant 0 : index
    %c0_60 = arith.constant 0 : index
    %c0_61 = arith.constant 0 : index
    %62 = vector.load %arg4[%c0_59, %c0_60, %c0_61] : memref<1x8x128xf32, #tpu.memory_space<vmem>>, vector<1x8x128xf32>
    %63 = vector.shape_cast %62 : vector<1x8x128xf32> to vector<8x128xf32>
    %64 = vector.shape_cast %61 : vector<8x128xf32> to vector<1x8x128xf32>
    tpu.vector_store %arg4[%c0_59, %c0_60, %c0_61], %64 {strides = array<i32>} : memref<1x8x128xf32, #tpu.memory_space<vmem>>, vector<1x8x128xf32>,
    return
  }
  func.func @transform_0(%arg0: i32) -> (i32, i32, i32) {
    %c0_i32 = arith.constant 0 : i32
    %c0_i32_0 = arith.constant 0 : i32
    %c0_i32_1 = arith.constant 0 : i32
    return %arg0, %c0_i32, %c0_i32_0 : i32, i32, i32
  }
  func.func @transform_1(%arg0: i32) -> (i32, i32, i32) {
    %c0_i32 = arith.constant 0 : i32
    %c0_i32_0 = arith.constant 0 : i32
    %c0_i32_1 = arith.constant 0 : i32
    %c0_i32_2 = arith.constant 0 : i32
    return %c0_i32, %c0_i32_0, %c0_i32_1 : i32, i32, i32
  }
  func.func @transform_2(%arg0: i32) -> (i32, i32) {
    %c0_i32 = arith.constant 0 : i32
    %c0_i32_0 = arith.constant 0 : i32
    %c0_i32_1 = arith.constant 0 : i32
    return %c0_i32, %c0_i32_0 : i32, i32
  }
  func.func @transform_3(%arg0: i32) -> (i32, i32, i32) {
    %c0_i32 = arith.constant 0 : i32
    %c0_i32_0 = arith.constant 0 : i32
    %c0_i32_1 = arith.constant 0 : i32
    return %arg0, %c0_i32, %c0_i32_0 : i32, i32, i32
  }
}

</mosaic_0001>

<bundles_post_ra>
// kernel: tpu_custom_call.1
= control target key start
LH: loop header
LB: loop body
LE: loop exit
PB: predicated region body
PF: predicated region fallthrough
CT: control target
= control target key end

     0   :  { %8 = vsyncpa [#allocation3], 0  ;;  %s1963_s0 = inlined_call_operand.hbm [shape: f32[2,16,64], index: 0, kind: input, shape index: {}]   ;;  %s1964_s1 = inlined_call_operand.hbm [shape: f32[9,64,128], index: 1, kind: input, shape index: {}]   ;;  %s1965_s2 = inlined_call_operand.vmem [shape: f32[1,128], index: 2, kind: input, shape index: {}]   ;;  %s1966_s3 = inlined_call_operand.hbm [shape: f32[2,8,128], index: 3, kind: output, shape index: {}]  }
   0x1   :  { %10 = vsyncpa [#allocation3 + $0x1], 0 }
   0x2   :  { %11 = vsyncpa [#allocation6], 0 }
   0x3   :  { %12 = vsyncpa [#allocation4], 0 }
   0x4   :  { %14 = vsyncpa [#allocation4 + $0x1], 0  ;;  %s1676_s12 = smov 0   ;;  %s1678_s13 = smov 0  }
   0x5   :  { %s1680_s14 = smov 0   ;;  %s1682_s15 = smov 0  }
   0x6 LB: > { %s1697_s16 = sadd.s32 4294967295, %s1645_s15   ;;  %s1067_s17 = sadd.s32 4294967294, %s1645_s15   ;;  %s1645_s15 = sphi %s1682_s15, %s1986_s15   ;;  %s1641_s14 = sphi %s1680_s14, %s1985_s14   ;;  %s1637_s13 = sphi %s1678_s13, %s1984_s13   ;;  %s1633_s12 = sphi %s1676_s12, %s1983_s12  }
   0x7   : > { %p40_p0 = scmp.ne.s32.totalorder %s1637_s13, %s1633_s12  ;;  %p1967_p1 = scmp.eq.s32.totalorder %s1697_s16, 0 }
   0x8   : > { %p112_p3 = scmp.eq.s32.totalorder %s1067_s17, 1  ;;  %p1068_p5 = scmp.ge.s32.totalorder %s1645_s15, 1 }
   0x9   : > { %p1706_p4 = por %p1967_p1, %p40_p0  ;;  %p119_p7 = scmp.lt.s32.totalorder %s1645_s15, 3 }
   0xa   : > { %p1711_p6 = por %p112_p3, %p40_p0  ;;  %s1647_s21 = smov [#allocation5]  }
   0xb   : > { %s1970_s18 = scalar_select %p1706_p4, 1, 0 }
   0xc   : > { %s1971_s19 = scalar_select %p1711_p6, 1, 0 }
   0xd   : > { %p1716_p8 = pnand %p1068_p5, %p119_p7  ;;  %s131_s22 = sshll.u32 %s1647_s21, 4  ;;  %s1720_s22 = int_to_ptr.vmem [resolvable:$true] %s131_s22 }
   0xe   : > { %s1732_s24 = sadd.s32 1, %s1645_s15   ;;  %s27_s25 = sadd.s32 1, %s1641_s14 }
   0xf   : > { %s1972_s20 = scalar_select %p1716_p8, 1, 0 }
  0x10   : > { %p1461_p9 = pneg %p1716_p8  ;;  %s24_s26 = ssub.s32 %s1645_s15, %s1732_s24 }
  0x11   : > { %s1517_s29 = scalar_lea.hbm %s1964_s1, 9216 }
  0x12   : > { %p1727_p11 = pnand %p1461_p9, %p1967_p1  ;;  %p1518_p12 = scmp.ne.s32.totalorder %s1964_s1, %s1517_s29 }
  0x13   : > { %p1524_p5 = scmp.lt.u32.totalorder %s1517_s29, %s1964_s1 }
  0x14   : > { %p1519_p13 = pneg %p1727_p11 }
  0x16   : > { %p1520_p0 = pnand %p1519_p13, %p1518_p12 }
  0x18   : > { %p1521_p3 = pneg %p1520_p0 }
  0x1a   : > { %p1526_p7 = pnand %p1524_p5, %p1521_p3 }
  0x1c   : > { %1529 = shalt.err (!%p1526_p7)
}
  0x1d   : > { %s1530_s7 = scalar_lea.vmem %s1720_s22, 9216  ;;  %p1538_p2 = scmp.lt.s32.totalorder %s1720_s22, %s1720_s22 }
  0x1e   : > { %p1531_p9 = scmp.ne.s32.totalorder %s1720_s22, %s1530_s7  ;;  %p1539_p6 = scmp.lt.s32.totalorder %s1530_s7, %s1530_s7 }
  0x20   : > { %p1533_p10 = pnand %p1531_p9, %p1519_p13  ;;  %p1540_p4 = por %p1539_p6, %p1538_p2 }
  0x22   : > { %p1534_p1 = pneg %p1533_p10 }
  0x24   : > { %p1541_p8 = pnand %p1540_p4, %p1534_p1 }
  0x26   : > { %1544 = shalt.err (!%p1541_p8)
}
  0x27   : > { %s1648_s8 = smov 128   ;;  %s1649_s9 = smov 8  }
  0x28   : > { %1464 = dma.hbm_to_vmem [thread:$0]  (!%p1727_p11), %s1964_s1, 9216, %s1720_s22, [#allocation6], %s1648_s8, %s1648_s8, %s1649_s9  }
  0x29   : > { %p25_p1 = scmp.eq.s32.totalorder %s24_s26, 0  ;;  %p34_p2 = scmp.ne.s32.totalorder %s1641_s14, %s1637_s13 }
  0x2a   : > { %p35_p4 = scmp.eq.s32.totalorder %s1645_s15, 0  ;;  %p1474_p6 = scmp.lt.s32.totalorder %s1645_s15, 2 }
  0x2b   : > { %s1766_s17 = scalar_select %p25_p1, %s1641_s14, %s27_s25  }
  0x2c   : > { %p36_p8 = por %p35_p4, %p34_p2  ;;  %p1974_p10 = scmp.eq.s32.totalorder %s1697_s16, 1 }
  0x2d   : > { %s148_s23 = sand.u32 1, %s1641_s14   ;;  %s1092_s27 = sshll.u32 %s1645_s15, 8 }
  0x2e   : > { %p1770_p12 = por %p1974_p10, %p34_p2  ;;  %s1071_s28 = sshll.u32 %s148_s23, 4 }
  0x2f   : > { %s1779_s4 = scalar_lea.hbm %s1963_s0, %s1092_s27  ;;  %s152_s22 = scalar_lea.vmem [#allocation2], %s1071_s28 }
  0x30   : > { %s159_s25 = sshll.u32 %s152_s22, 4  ;;  %p1781_p11 = pnand %p1474_p6, %p36_p8  ;;  %s1785_s25 = int_to_ptr.vmem [resolvable:$true] %s159_s25 }
  0x31   : > { %s1787_s5 = scalar_lea.sflag [#allocation3], %s148_s23  ;;  %s1545_s6 = scalar_lea.hbm %s1779_s4, 256 }
  0x32   : > { %p1546_p13 = scmp.ne.s32.totalorder %s1779_s4, %s1545_s6  ;;  %p1547_p0 = pneg %p1781_p11 }
  0x33   : > { %s1550_s11 = scalar_lea.hbm %s1963_s0, 512  ;;  %p1551_p7 = scmp.lt.u32.totalorder %s1779_s4, %s1963_s0 }
  0x34   : > { %p1548_p3 = pnand %p1547_p0, %p1546_p13  ;;  %p1552_p9 = scmp.lt.u32.totalorder %s1550_s11, %s1545_s6 }
  0x35   : > { %p1554_p2 = scmp.lt.u32.totalorder %s1545_s6, %s1779_s4 }
  0x36   : > { %p1549_p5 = pneg %p1548_p3  ;;  %p1553_p1 = por %p1552_p9, %p1551_p7 }
  0x38   : > { %p1555_p4 = por %p1554_p2, %p1553_p1 }
  0x3a   : > { %p1556_p6 = pnand %p1555_p4, %p1549_p5 }
  0x3c   : > { %1559 = shalt.err (!%p1556_p6)
}
  0x3d   : > { %s1560_s23 = scalar_lea.vmem %s1785_s25, 256  ;;  %s1650_s29 = smov [#allocation2]  }
  0x3e   : > { %p1561_p8 = scmp.ne.s32.totalorder %s1785_s25, %s1560_s23  ;;  %s1565_s30 = sshll.u32 %s1650_s29, 4  ;;  %s1566_s30 = int_to_ptr.vmem [resolvable:$false] %s1565_s30 }
  0x3f   : > { %s1567_s22 = scalar_lea.vmem %s1566_s30, 512  ;;  %p1568_p3 = scmp.lt.s32.totalorder %s1785_s25, %s1566_s30 }
  0x40   : > { %p1563_p10 = pnand %p1561_p8, %p1547_p0  ;;  %p1569_p7 = scmp.lt.s32.totalorder %s1567_s22, %s1560_s23 }
  0x42   : > { %p1564_p13 = pneg %p1563_p10  ;;  %p1570_p9 = por %p1569_p7, %p1568_p3 }
  0x44   : > { %p1571_p1 = pnand %p1570_p9, %p1564_p13 }
  0x46   : > { %1574 = shalt.err (!%p1571_p1)
}
  0x47   : > { %1468 = dma.hbm_to_vmem [thread:$0]  (!%p1781_p11), %s1779_s4, 256, %s1785_s25, %s1787_s5, %s1648_s8, %s1648_s8, %s1649_s9  }
  0x48   : > { %p1977_p0 = scmp.ne.s32.totalorder %s1972_s20, 0 }
  0x49   : > { %s1821_s6 = sand.u32 (!%p1977_p0), 1, %s1637_s13   ;;  %p1978_p5 = scmp.ne.s32.totalorder (!%p1977_p0), %s1970_s18, 0 }
  0x4a   : > { %171 = sbr.rel (%p1977_p0) target bundleno = 401 (0x191), region = 32  ;;  %s1075_s7 = sshll.u32 (!%p1977_p0), %s1821_s6, 4 }
  0x4b   : > { %s174_s10 = scalar_lea.sflag (!%p1977_p0), [#allocation3], %s1821_s6  ;;  %s1825_s11 = scalar_lea.vmem (!%p1977_p0), [#allocation2], %s1075_s7 }
  0x51   : > { %1620 = dma.done.wait (%p1978_p5), %s174_s10, 256  }
  0x52   : > { %1622 = vsyncadd (%p1978_p5), %s174_s10, 4294967040  ;;  %p1979_p11 = scmp.eq.s32.totalorder %s1697_s16, 0 }
  0x54   : > { %1624 = dma.done.wait (%p1979_p11), [#allocation6], 9216   ;;  %p1980_p2 = pmov %p1979_p11 }
  0x55   : > { %v1651_v0 = vmov 0.0|0.0   ;;  %vm1652_vm0 = vmmov 0   ;;  %v1653_v1 = vmov 0.0   ;;  %v1654_v2 = vmov 0   ;;  %v216_v3 = vld [vmem:[#allocation5 + $0x40] sm:$0xff]  ;;  %v217_v4 = vld [vmem:[#allocation5 + $0x48] sm:$0xff] }
  0x56   : > { %1626 = vsyncadd (%p1980_p2), [#allocation6], 4294958080  ;;  %1345 = vmatprep.subr.bf16.mxu0 %v1651_v0  ;;  %1357 = vmatprep.subr.bf16.mxu1 %v1651_v0  ;;  %v206_v5 = vld [vmem:[#allocation5] sm:$0xff]  ;;  %v1346_v6 = vpack.c.bf16 %v217_v4, %v216_v3  ;;  %v207_v7 = vld [vmem:[#allocation5 + $0x8] sm:$0xff]  ;;  %vm224_vm1 = vcmask 523264   ;;  %s1077_s18 = sshll.u32 %s1821_s6, 3 }
  0x57   : > { %1190 = vmatprep.mubr.msk.f32.mxu0 %vm1652_vm0, %v1653_v1  ;;  %1209 = vmatprep.mubr.msk.f32.mxu1 %vm1652_vm0, %v1653_v1  ;;  %v218_v8 = vld [vmem:[#allocation5 + $0x50] sm:$0xff]  ;;  %v219_v9 = vld [vmem:[#allocation5 + $0x58] sm:$0xff]  ;;  %v1358_v10 = vpack.c.bf16 %v207_v7, %v206_v5  ;;  %v220_v15 = vld [vmem:[#allocation5 + $0x60] sm:$0xff]  ;;  %s1089_s9 = sshll.u32 %s1697_s16, 7  ;;  %s203_s4 = scalar_lea.vmem [#allocation7], %s1077_s18 }
  0x58   : > { %1516 = vset.pattern.permute.xlu0 %v1654_v2  ;;  %v208_v11 = vld [vmem:[#allocation5 + $0x10] sm:$0xff]  ;;  %v209_v12 = vld [vmem:[#allocation5 + $0x18] sm:$0xff]  ;;  %1347 = vmatpush3.bf16.msra.mxu0 %v1346_v6  ;;  %v1349_v13 = vpack.c.bf16 %v219_v9, %v218_v8  ;;  %v221_v16 = vld [vmem:[#allocation5 + $0x68] sm:$0xff]  ;;  %s987_s25 = sshll.u32 %s203_s4, 4  ;;  %s1919_s27 = scalar_lea.hbm %s1966_s3, %s1089_s9  ;;  %s1921_s25 = int_to_ptr.vmem [resolvable:$true] %s987_s25 }
  0x59   : > { %1359 = vmatpush3.bf16.msra.mxu1 %v1358_v10  ;;  %1348 = vmatprep.subr.bf16.mxu0 %v1651_v0  ;;  %v1361_v14 = vpack.c.bf16 %v209_v12, %v208_v11  ;;  %v210_v17 = vld [vmem:[#allocation5 + $0x20] sm:$0xff]  ;;  %v211_v18 = vld [vmem:[#allocation5 + $0x28] sm:$0xff]  ;;  %v1352_v19 = vpack.c.bf16 %v221_v16, %v220_v15  ;;  %v222_v21 = vld [vmem:[#allocation5 + $0x70] sm:$0xff]  ;;  %s974_s28 = scalar_lea.sflag [#allocation4], %s1821_s6  ;;  %s1575_s23 = scalar_lea.vmem %s1921_s25, 128 }
  0x5a   : > { %1360 = vmatprep.subr.bf16.mxu1 %v1651_v0  ;;  %v1364_v20 = vpack.c.bf16 %v211_v18, %v210_v17  ;;  %v223_v22 = vld [vmem:[#allocation5 + $0x78] sm:$0xff]  ;;  %v212_v23 = vld [vmem:[#allocation5 + $0x30] sm:$0xff]  ;;  %v373_v27 = vld [vmem:[#allocation5 + $0x80] sm:$0xff]  ;;  %p1576_p4 = scmp.ne.s32.totalorder %s1921_s25, %s1575_s23  ;;  %s1655_s16 = smov [#allocation7]  }
  0x5b   : > { %v213_v24 = vld [vmem:[#allocation5 + $0x38] sm:$0xff]  ;;  %v1355_v25 = vpack.c.bf16 %v223_v22, %v222_v21  ;;  %v374_v28 = vld [vmem:[#allocation5 + $0x88] sm:$0xff]  ;;  %v457_v29 = vld [vmem:[#allocation5 + $0xc0] sm:$0xff]  ;;  %s1579_s29 = sshll.u32 %s1655_s16, 4  ;;  %s1580_s29 = int_to_ptr.vmem [resolvable:$false] %s1579_s29 }
  0x5c   : > { %1350 = vmatpush3.bf16.msra.mxu0 %v1349_v13  ;;  %v1367_v26 = vpack.c.bf16 %v213_v24, %v212_v23  ;;  %v458_v30 = vld [vmem:[#allocation5 + $0xc8] sm:$0xff]  ;;  %v1370_v32 = vpack.c.bf16 %v374_v28, %v373_v27  ;;  %v205_v33 = vld [vmem:[%s1825_s11] sm:$0xff]  ;;  %v376_v36 = vld [vmem:[#allocation5 + $0x98] sm:$0xff]  ;;  %p1577_p6 = pnand %p1576_p4, %p1770_p12  ;;  %s1581_s30 = scalar_lea.vmem %s1580_s29, 256 }
  0x5d   : > { %1362 = vmatpush3.bf16.msra.mxu1 %v1361_v14  ;;  %1351 = vmatprep.subr.bf16.mxu0 %v1651_v0  ;;  %v214_v31 = vld [vmem:[%s1825_s11 + $0x1] sm:$0xff]  ;;  %v1382_v34 = vpack.c.bf16 %v458_v30, %v457_v29  ;;  %p1582_p10 = scmp.lt.s32.totalorder %s1921_s25, %s1580_s29  ;;  %p1583_p13 = scmp.lt.s32.totalorder %s1581_s30, %s1575_s23 }
  0x5e   : > { %1363 = vmatprep.subr.bf16.mxu1 %v1651_v0  ;;  %v375_v35 = vld [vmem:[#allocation5 + $0x90] sm:$0xff]  ;;  %v460_v38 = vld [vmem:[#allocation5 + $0xd8] sm:$0xff]  ;;  %v377_v42 = vld [vmem:[#allocation5 + $0xa0] sm:$0xff]  ;;  %p1578_p8 = pneg %p1577_p6 }
  0x5f   : > { %v459_v37 = vld [vmem:[#allocation5 + $0xd0] sm:$0xff]  ;;  %v1373_v40 = vpack.c.bf16 %v376_v36, %v375_v35  ;;  %v378_v43 = vld [vmem:[#allocation5 + $0xa8] sm:$0xff]  ;;  %v461_v44 = vld [vmem:[#allocation5 + $0xe0] sm:$0xff]  ;;  %p1584_p3 = por %p1583_p13, %p1582_p10 }
  0x60   : > { %1353 = vmatpush3.bf16.msra.mxu0 %v1352_v19  ;;  %v1852_v39 = vld [vmem:[%s1825_s11 + $0x4] sm:$0xff]  ;;  %v1385_v41 = vpack.c.bf16 %v460_v38, %v459_v37  ;;  %v1376_v46 = vpack.c.bf16 %v378_v43, %v377_v42 }
  0x61   : > { %1365 = vmatpush3.bf16.msra.mxu1 %v1364_v20  ;;  %1354 = vmatprep.subr.bf16.mxu0 %v1651_v0  ;;  %v462_v45 = vld [vmem:[#allocation5 + $0xe8] sm:$0xff]  ;;  %v379_v48 = vld [vmem:[#allocation5 + $0xb0] sm:$0xff]  ;;  %v380_v49 = vld [vmem:[#allocation5 + $0xb8] sm:$0xff]  ;;  %p1585_p7 = pnand %p1584_p3, %p1578_p8 }
  0x62   : > { %1366 = vmatprep.subr.bf16.mxu1 %v1651_v0  ;;  %968 = vperm.xlu0 %1516, %v1852_v39   ;;  %v1388_v47 = vpack.c.bf16 %v462_v45, %v461_v44  ;;  %v463_v50 = vld [vmem:[#allocation5 + $0xf0] sm:$0xff]  ;;  %v464_v51 = vld [vmem:[#allocation5 + $0xf8] sm:$0xff]  ;;  %v1379_v52 = vpack.c.bf16 %v380_v49, %v379_v48  ;;  %v541_v54 = vld [vmem:[#allocation5 + $0x100] sm:$0xff] }
  0x63   : > { %v1391_v53 = vpack.c.bf16 %v464_v51, %v463_v50  ;;  %v542_v55 = vld [vmem:[#allocation5 + $0x108] sm:$0xff]  ;;  %v625_v56 = vld [vmem:[#allocation5 + $0x140] sm:$0xff]  ;;  %v543_v62 = vld [vmem:[#allocation5 + $0x110] sm:$0xff] }
  0x64   : > { %1356 = vmatpush3.bf16.msra.mxu0 %v1355_v25  ;;  %v626_v57 = vld [vmem:[#allocation5 + $0x148] sm:$0xff]  ;;  %v1394_v59 = vpack.c.bf16 %v542_v55, %v541_v54  ;;  %v544_v63 = vld [vmem:[#allocation5 + $0x118] sm:$0xff]  ;;  %v627_v2 = vld [vmem:[#allocation5 + $0x150] sm:$0xff] }
  0x65   : > { %1368 = vmatpush3.bf16.msra.mxu1 %v1367_v26  ;;  %1369 = vmatprep.subr.bf16.mxu0 %v1651_v0  ;;  %v371_v58 = vld [vmem:[%s1825_s11 + $0x2] sm:$0xff]  ;;  %v1406_v61 = vpack.c.bf16 %v626_v57, %v625_v56  ;;  %v1397_v4 = vpack.c.bf16 %v544_v63, %v543_v62 }
  0x66   : > { %1381 = vmatprep.subr.bf16.mxu1 %v1651_v0  ;;  %v455_v60 = vld [vmem:[%s1825_s11 + $0x3] sm:$0xff] }
  0x67   : > { %1191 = vmatmul.mubr.msk.f32.vlgmr.msra.gmra.mrb[0].mxu0 %vm224_vm1, %v214_v31  ;;  %v628_v3 = vld [vmem:[#allocation5 + $0x158] sm:$0xff]  ;;  %v545_v6 = vld [vmem:[#allocation5 + $0x120] sm:$0xff]  ;;  %v546_v7 = vld [vmem:[#allocation5 + $0x128] sm:$0xff] }
  0x68   : > { %1210 = vmatmul.mubr.msk.f32.vlgmr.msra.gmra.mrb[0].mxu1 %vm224_vm1, %v205_v33  ;;  %1371 = vmatpush3.bf16.msra.mxu0 %v1370_v32  ;;  %v1409_v5 = vpack.c.bf16 %v628_v3, %v627_v2  ;;  %v629_v8 = vld [vmem:[#allocation5 + $0x160] sm:$0xff]  ;;  %v630_v9 = vld [vmem:[#allocation5 + $0x168] sm:$0xff]  ;;  %v1400_v10 = vpack.c.bf16 %v546_v7, %v545_v6  ;;  %v547_v12 = vld [vmem:[#allocation5 + $0x130] sm:$0xff] }
  0x69   : > { %1383 = vmatpush3.bf16.msra.mxu1 %v1382_v34  ;;  %1372 = vmatprep.subr.bf16.mxu0 %v1651_v0  ;;  %v1412_v11 = vpack.c.bf16 %v630_v9, %v629_v8  ;;  %v548_v13 = vld [vmem:[#allocation5 + $0x138] sm:$0xff]  ;;  %v631_v14 = vld [vmem:[#allocation5 + $0x170] sm:$0xff]  ;;  %v709_v18 = vld [vmem:[#allocation5 + $0x180] sm:$0xff] }
  0x6a   : > { %1384 = vmatprep.subr.bf16.mxu1 %v1651_v0  ;;  %1228 = vmatprep.mubr.msk.f32.mxu0 %vm1652_vm0, %v1653_v1  ;;  %v632_v15 = vld [vmem:[#allocation5 + $0x178] sm:$0xff]  ;;  %v1403_v16 = vpack.c.bf16 %v548_v13, %v547_v12  ;;  %v710_v19 = vld [vmem:[#allocation5 + $0x188] sm:$0xff]  ;;  %v793_v20 = vld [vmem:[#allocation5 + $0x1c0] sm:$0xff] }
  0x6b   : > { %1247 = vmatprep.mubr.msk.f32.mxu1 %vm1652_vm0, %v1653_v1  ;;  %v1415_v17 = vpack.c.bf16 %v632_v15, %v631_v14  ;;  %v794_v21 = vld [vmem:[#allocation5 + $0x1c8] sm:$0xff]  ;;  %v1418_v22 = vpack.c.bf16 %v710_v19, %v709_v18  ;;  %v711_v25 = vld [vmem:[#allocation5 + $0x190] sm:$0xff]  ;;  %v712_v26 = vld [vmem:[#allocation5 + $0x198] sm:$0xff] }
  0x6c   : > { %1374 = vmatpush3.bf16.msra.mxu0 %v1373_v40  ;;  %v623_v23 = vld [vmem:[%s1825_s11 + $0x5] sm:$0xff]  ;;  %v1430_v24 = vpack.c.bf16 %v794_v21, %v793_v20  ;;  %v1421_v29 = vpack.c.bf16 %v712_v26, %v711_v25 }
  0x6d   : > { %1386 = vmatpush3.bf16.msra.mxu1 %v1385_v41  ;;  %1375 = vmatprep.subr.bf16.mxu0 %v1651_v0  ;;  %v795_v27 = vld [vmem:[#allocation5 + $0x1d0] sm:$0xff]  ;;  %v796_v28 = vld [vmem:[#allocation5 + $0x1d8] sm:$0xff]  ;;  %v713_v31 = vld [vmem:[#allocation5 + $0x1a0] sm:$0xff] }
  0x6e   : > { %1387 = vmatprep.subr.bf16.mxu1 %v1651_v0  ;;  %v1433_v30 = vpack.c.bf16 %v796_v28, %v795_v27  ;;  %v714_v32 = vld [vmem:[#allocation5 + $0x1a8] sm:$0xff]  ;;  %v797_v33 = vld [vmem:[#allocation5 + $0x1e0] sm:$0xff]  ;;  %v715_v37 = vld [vmem:[#allocation5 + $0x1b0] sm:$0xff] }
  0x6f   : > { %v798_v34 = vld [vmem:[#allocation5 + $0x1e8] sm:$0xff]  ;;  %v1424_v35 = vpack.c.bf16 %v714_v32, %v713_v31  ;;  %v716_v38 = vld [vmem:[#allocation5 + $0x1b8] sm:$0xff]  ;;  %v877_v43 = vld [vmem:[#allocation5 + $0x200] sm:$0xff] }
  0x70   : > { %1377 = vmatpush3.bf16.msra.mxu0 %v1376_v46  ;;  %v1436_v36 = vpack.c.bf16 %v798_v34, %v797_v33  ;;  %v800_v40 = vld [vmem:[#allocation5 + $0x1f8] sm:$0xff]  ;;  %v1427_v41 = vpack.c.bf16 %v716_v38, %v715_v37  ;;  %v878_v44 = vld [vmem:[#allocation5 + $0x208] sm:$0xff]  ;;  %v879_v48 = vld [vmem:[#allocation5 + $0x210] sm:$0xff] }
  0x71   : > { %1389 = vmatpush3.bf16.msra.mxu1 %v1388_v47  ;;  %1378 = vmatprep.subr.bf16.mxu0 %v1651_v0  ;;  %v707_v45 = vld [vmem:[%s1825_s11 + $0x6] sm:$0xff]  ;;  %v1442_v46 = vpack.c.bf16 %v878_v44, %v877_v43 }
  0x72   : > { %1390 = vmatprep.subr.bf16.mxu1 %v1651_v0  ;;  %v791_v47 = vld [vmem:[%s1825_s11 + $0x7] sm:$0xff] }
  0x73   : > { %v880_v49 = vld [vmem:[#allocation5 + $0x218] sm:$0xff]  ;;  %v881_v51 = vld [vmem:[#allocation5 + $0x220] sm:$0xff]  ;;  %v883_v54 = vld [vmem:[#allocation5 + $0x230] sm:$0xff] }
  0x74   : > { %1380 = vmatpush3.bf16.msra.mxu0 %v1379_v52  ;;  %v1445_v50 = vpack.c.bf16 %v880_v49, %v879_v48  ;;  %v882_v52 = vld [vmem:[#allocation5 + $0x228] sm:$0xff]  ;;  %v884_v55 = vld [vmem:[#allocation5 + $0x238] sm:$0xff] }
  0x75   : > { %1392 = vmatpush3.bf16.msra.mxu1 %v1391_v53  ;;  %1393 = vmatprep.subr.bf16.mxu0 %v1651_v0  ;;  %v1448_v53 = vpack.c.bf16 %v882_v52, %v881_v51  ;;  %v1451_v56 = vpack.c.bf16 %v884_v55, %v883_v54  ;;  %v875_v57 = vld [vmem:[%s1825_s11 + $0x8] sm:$0xff] }
  0x76   : > { %1405 = vmatprep.subr.bf16.mxu1 %v1651_v0 }
  0x77   : > { %1229 = vmatmul.mubr.msk.f32.vlgmr.msra.gmra.mrb[2].mxu0 %vm224_vm1, %v371_v58 }
  0x78   : > { %1395 = vmatpush3.bf16.msra.mxu0 %v1394_v59  ;;  %1248 = vmatmul.mubr.msk.f32.vlgmr.msra.gmra.mrb[2].mxu1 %vm224_vm1, %v455_v60 }
  0x79   : > { %1407 = vmatpush3.bf16.msra.mxu1 %v1406_v61  ;;  %1396 = vmatprep.subr.bf16.mxu0 %v1651_v0 }
  0x7a   : > { %1408 = vmatprep.subr.bf16.mxu1 %v1651_v0  ;;  %1266 = vmatprep.mubr.msk.f32.mxu0 %vm1652_vm0, %v1653_v1 }
  0x7b   : > { %1285 = vmatprep.mubr.msk.f32.mxu1 %vm1652_vm0, %v1653_v1 }
  0x7c   : > { %1398 = vmatpush3.bf16.msra.mxu0 %v1397_v4 }
  0x7d   : > { %1410 = vmatpush3.bf16.msra.mxu1 %v1409_v5  ;;  %1399 = vmatprep.subr.bf16.mxu0 %v1651_v0 }
  0x7e   : > { %1411 = vmatprep.subr.bf16.mxu1 %v1651_v0 }
  0x80   : > { %1401 = vmatpush3.bf16.msra.mxu0 %v1400_v10 }
  0x81   : > { %1413 = vmatpush3.bf16.msra.mxu1 %v1412_v11  ;;  %1402 = vmatprep.subr.bf16.mxu0 %v1651_v0 }
  0x82   : > { %1414 = vmatprep.subr.bf16.mxu1 %v1651_v0 }
  0x84   : > { %1404 = vmatpush3.bf16.msra.mxu0 %v1403_v16 }
  0x85   : > { %1416 = vmatpush3.bf16.msra.mxu1 %v1415_v17  ;;  %1417 = vmatprep.subr.bf16.mxu0 %v1651_v0  ;;  %v1087_v17 = vld [vmem:[%s1965_s2] ss:$0 sm:$0xff] }
  0x86   : > { %1429 = vmatprep.subr.bf16.mxu1 %v1651_v0 }
  0x87   : > { %1267 = vmatmul.mubr.msk.f32.vlgmr.msra.gmra.mrb[4].mxu0 %vm224_vm1, %v1852_v39  ;;  %v799_v39 = vld [vmem:[#allocation5 + $0x1f0] sm:$0xff] }
  0x88   : > { %1419 = vmatpush3.bf16.msra.mxu0 %v1418_v22  ;;  %1286 = vmatmul.mubr.msk.f32.vlgmr.msra.gmra.mrb[4].mxu1 %vm224_vm1, %v623_v23  ;;  %v1439_v42 = vpack.c.bf16 %v800_v40, %v799_v39 }
  0x89   : > { %1431 = vmatpush3.bf16.msra.mxu1 %v1430_v24  ;;  %1420 = vmatprep.subr.bf16.mxu0 %v1651_v0 }
  0x8a   : > { %1432 = vmatprep.subr.bf16.mxu1 %v1651_v0  ;;  %1304 = vmatprep.mubr.msk.f32.mxu0 %vm1652_vm0, %v1653_v1 }
  0x8b   : > { %1323 = vmatprep.mubr.msk.f32.mxu1 %vm1652_vm0, %v1653_v1 }
  0x8c   : > { %1422 = vmatpush3.bf16.msra.mxu0 %v1421_v29 }
  0x8d   : > { %1434 = vmatpush3.bf16.msra.mxu1 %v1433_v30  ;;  %1423 = vmatprep.subr.bf16.mxu0 %v1651_v0 }
  0x8e   : > { %1435 = vmatprep.subr.bf16.mxu1 %v1651_v0 }
  0x90   : > { %1425 = vmatpush3.bf16.msra.mxu0 %v1424_v35 }
  0x91   : > { %1437 = vmatpush3.bf16.msra.mxu1 %v1436_v36  ;;  %1426 = vmatprep.subr.bf16.mxu0 %v1651_v0 }
  0x92   : > { %1438 = vmatprep.subr.bf16.mxu1 %v1651_v0 }
  0x94   : > { %1428 = vmatpush3.bf16.msra.mxu0 %v1427_v41 }
  0x95   : > { %1440 = vmatpush3.bf16.msra.mxu1 %v1439_v42  ;;  %1441 = vmatprep.subr.bf16.mxu0 %v1651_v0 }
  0x97   : > { %1305 = vmatmul.mubr.msk.f32.vlgmr.msra.gmra.mrb[6].mxu0 %vm224_vm1, %v707_v45 }
  0x98   : > { %1443 = vmatpush3.bf16.msra.mxu0 %v1442_v46  ;;  %1324 = vmatmul.mubr.msk.f32.vlgmr.msra.gmra.mrb[6].mxu1 %vm224_vm1, %v791_v47 }
  0x99   : > { %1444 = vmatprep.subr.bf16.mxu0 %v1651_v0  ;;  %1342 = vmatprep.mubr.msk.f32.mxu0 %vm1652_vm0, %v1653_v1 }
  0x9c   : > { %1446 = vmatpush3.bf16.msra.mxu0 %v1445_v50 }
  0x9d   : > { %1447 = vmatprep.subr.bf16.mxu0 %v1651_v0 }
  0xa0   : > { %1449 = vmatpush3.bf16.msra.mxu0 %v1448_v53 }
  0xa1   : > { %1450 = vmatprep.subr.bf16.mxu0 %v1651_v0 }
  0xa4   : > { %1452 = vmatpush3.bf16.msra.mxu0 %v1451_v56 }
  0xa7   : > { %1343 = vmatmul.mubr.msk.f32.vlgmr.msra.gmra.mrb[8].mxu0 %vm224_vm1, %v875_v57 }
  0xe1   : > { %v969_v22 = vpop.permute.xlu0 %968 }
 0x13a   : > { %v294_v58 = vpop.f32.mrb[0].mxu0 }
 0x13b   : > { %v1192_v59 = vpop.f32.mrb[1].mxu0  ;;  %v367_v60 = vpop.f32.mrb[0].mxu1 }
 0x13c   : > { %v368_v61 = vadd.f32 %v367_v60, %v294_v58  ;;  %v1211_v62 = vpop.f32.mrb[1].mxu1 }
 0x14a   : > { %v450_v1 = vpop.f32.mrb[2].mxu0 }
 0x14b   : > { %v454_v63 = vadd.f32 %v450_v1, %v368_v61  ;;  %v1230_v2 = vpop.f32.mrb[3].mxu0  ;;  %v534_v3 = vpop.f32.mrb[2].mxu1 }
 0x14c   : > { %v1249_v4 = vpop.f32.mrb[3].mxu1 }
 0x14d   : > { %v538_v5 = vadd.f32 %v534_v3, %v454_v63 }
 0x15a   : > { %v618_v6 = vpop.f32.mrb[4].mxu0 }
 0x15b   : > { %v622_v7 = vadd.f32 %v618_v6, %v538_v5  ;;  %v1268_v8 = vpop.f32.mrb[5].mxu0  ;;  %v702_v0 = vpop.f32.mrb[4].mxu1 }
 0x15c   : > { %v1287_v9 = vpop.f32.mrb[5].mxu1 }
 0x15d   : > { %v706_v10 = vadd.f32 %v702_v0, %v622_v7 }
 0x16a   : > { %v786_v11 = vpop.f32.mrb[6].mxu0 }
 0x16b   : > { %v790_v12 = vadd.f32 %v786_v11, %v706_v10  ;;  %v1306_v13 = vpop.f32.mrb[7].mxu0  ;;  %v870_v14 = vpop.f32.mrb[6].mxu1 }
 0x16c   : > { %v1325_v15 = vpop.f32.mrb[7].mxu1 }
 0x16d   : > { %v874_v16 = vadd.f32 %v870_v14, %v790_v12 }
 0x17a   : > { %v954_v18 = vpop.f32.mrb[8].mxu0 }
 0x17b   : > { %v958_v19 = vadd.f32 %v954_v18, %v874_v16  ;;  %v1344_v20 = vpop.f32.mrb[9].mxu0 }
 0x17d   : > { %v965_v21 = vadd.f32 %v1087_v17, %v958_v19 }
 0x17f   : > { %v966_v23 = vmax.f32 %v965_v21, 0.0 }
 0x181   : > { %v971_v24 = vmul.f32 %v969_v22, %v966_v23 }
 0x183   : > { %972 = vst [vmem:[%s203_s4] sm:$0xff] %v971_v24 }
 0x184   : > { %1588 = shalt.err (!%p1585_p7)
}
 0x185   : > { %s1589_s22 = scalar_lea.hbm %s1919_s27, 128  ;;  %s1593_s10 = scalar_lea.hbm %s1966_s3, 256 }
 0x186   : > { %p1590_p9 = scmp.ne.s32.totalorder %s1919_s27, %s1589_s22  ;;  %p1594_p5 = scmp.lt.u32.totalorder %s1919_s27, %s1966_s3 }
 0x187   : > { %p1595_p11 = scmp.lt.u32.totalorder %s1593_s10, %s1589_s22  ;;  %p1597_p4 = scmp.lt.u32.totalorder %s1589_s22, %s1919_s27 }
 0x188   : > { %p1591_p1 = pnand %p1590_p9, %p1770_p12 }
 0x189   : > { %p1596_p2 = por %p1595_p11, %p1594_p5 }
 0x18a   : > { %p1592_p0 = pneg %p1591_p1 }
 0x18b   : > { %p1598_p6 = por %p1597_p4, %p1596_p2 }
 0x18d   : > { %p1599_p8 = pnand %p1598_p6, %p1592_p0 }
 0x18f   : > { %1602 = shalt.err (!%p1599_p8)
}
 0x190   : > { %1459 = dma.vmem_to_hbm [thread:$0]  (%p1770_p12), %s1921_s25, 128, %s1919_s27, %s974_s28  }
 0x191 PF: > { %s999_s20 = sand.u32 1, %s1633_s12   ;;  %p1981_p10 = scmp.ne.s32.totalorder %s1971_s19, 0 }
 0x192   : > { %p1982_p13 = scmp.ge.s32.totalorder %s1645_s15, 2  ;;  %s1000_s8 = scalar_lea.sflag [#allocation4], %s999_s20 }
 0x194   : > { %p1470_p3 = pnand %p1982_p13, %p1981_p10 }
 0x196   : > { %1628 = dma.done.wait (!%p1470_p3), %s1000_s8, 128  }
 0x197   : > { %1630 = vsyncadd (!%p1470_p3), %s1000_s8, 4294967168  ;;  %p17_p7 = scmp.ge.s32.totalorder %s1732_s24, 4   ;;  %s1983_s12 = smov %s1637_s13 }
 0x198   : > { %s1984_s13 = smov %s1641_s14  ;;  %s1985_s14 = smov %s1766_s17 }
 0x199   : > { %s1986_s15 = smov %s1732_s24  ;;  %19 = sbr.rel (!%p17_p7) target bundleno = 6 (0x6), region = 89 }
 0x1a0   :  { %1005 = vsyncpa [#allocation3], 1 }
 0x1a1   :  { %1007 = vsyncpa [#allocation3 + $0x1], 1 }
 0x1a2   :  { %1008 = vsyncpa [#allocation6], 1 }
 0x1a3   :  { %1009 = vsyncpa [#allocation4], 1 }
 0x1a4   :  { %1011 = vsyncpa [#allocation4 + $0x1], 1 }

</bundles_post_ra>
